<compile_context>
chip_gen: v6e
topology: v6e:2x2x1
jax: 0.10.0
libtpu: 0.0.40
codegen_flags: <defaults>
</compile_context>

<pallas_src>
import jax
import jax.numpy as jnp
from jax import lax
from jax.experimental import pallas as pl
from jax.experimental.pallas import tpu as pltpu


# ----------------------------- Pallas kernel ------------------------------ #
def _matmul_bias_relu_kernel(p_ref, w_ref, shift_ref, o_ref):
    # p_ref:     (TM, K)          im2col patch rows (bf16)
    # w_ref:     (K, C_out_pad)   BN-scale-folded conv weights (bf16)
    # shift_ref: (1, C_out_pad)   folded BN shift (includes conv bias), f32
    # o_ref:     (TM, C_out_pad)  f32, lane-dense (C_out_pad % 128 == 0)
    acc = jnp.dot(p_ref[...], w_ref[...], preferred_element_type=jnp.float32)
    o_ref[...] = jnp.maximum(acc + shift_ref[...], 0.0).astype(o_ref.dtype)


def _pick_tm(M):
    """Large row tile, dividing M when possible, keeping >= 2 grid steps."""
    for cand in (1024, 512, 256):
        if M % cand == 0 and M // cand >= 2:
            return cand
    for cand in (1024, 512, 256):
        if M >= 2 * cand:
            return cand
    return 128


def _pallas_matmul_bias_relu(patches, w_flat, shift):
    M, K = patches.shape
    Cp = w_flat.shape[1]                     # already padded to multiple of 128

    tm = _pick_tm(M)
    M_pad = pl.cdiv(M, tm) * tm
    if M_pad != M:
        # Tail fallback only; _pick_tm avoids this for common shapes so the
        # 9x-expanded patch matrix is not copied through HBM just to pad.
        patches = jnp.pad(patches, ((0, M_pad - M), (0, 0)))

    grid = (M_pad // tm,)
    out = pl.pallas_call(
        _matmul_bias_relu_kernel,
        out_shape=jax.ShapeDtypeStruct((M_pad, Cp), jnp.float32),
        grid_spec=pltpu.PrefetchScalarGridSpec(
            num_scalar_prefetch=0,
            grid=grid,
            in_specs=[
                pl.BlockSpec((tm, K), lambda i: (i, 0)),
                pl.BlockSpec((K, Cp), lambda i: (0, 0)),
                pl.BlockSpec((1, Cp), lambda i: (0, 0)),
            ],
            out_specs=pl.BlockSpec((tm, Cp), lambda i: (i, 0)),
        ),
        compiler_params=pltpu.CompilerParams(
            dimension_semantics=("parallel",),
            vmem_limit_bytes=32 * 1024 * 1024,
        ),
    )(patches, w_flat, shift)
    return out[:M]


# ------------------------------- JAX glue ---------------------------------- #
def _im2col_3x3_same_nhwc(x_nhwc):
    """x: (N, H, W, C) -> patches (N*H*W, 9*C); K-order = (kh, kw, c).

    Channels-last slicing + concat along the last axis keeps the final reshape
    layout-free (no 5-D transpose / relayout of the 9x patch tensor).
    """
    N, H, W, C = x_nhwc.shape
    xp = jnp.pad(x_nhwc, ((0, 0), (1, 1), (1, 1), (0, 0)))
    taps = [xp[:, kh:kh + H, kw:kw + W, :] for kh in range(3) for kw in range(3)]
    patches = jnp.concatenate(taps, axis=-1)            # (N, H, W, 9*C)
    return patches.reshape(N * H * W, 9 * C)


def basic_conv_forward(x, params, *, compute_dtype=jnp.bfloat16):
    """BasicConv forward: Conv2d(3x3, stride=1, pad=1) -> BatchNorm2d (eval) -> ReLU."""
    N, C_in, H, W = x.shape
    w, b, gamma, beta, r_mean, r_var, eps = (
        params["w"], params["b"], params["gamma"], params["beta"],
        params["running_mean"], params["running_var"], params["eps"])
    C_out = w.shape[0]
    C_out_pad = pl.cdiv(C_out, 128) * 128

    # Fold BN (inference): y = conv(x, w*scale) + ((b - mean)*scale + beta)
    scale = gamma * lax.rsqrt(r_var + eps)               # (C_out,)
    shift = (b - r_mean) * scale + beta                  # (C_out,)

    # Weights flattened with K-order (kh, kw, c) to match the im2col ordering,
    # BN scale folded in, then lane-padded to a multiple of 128.
    w_flat = w.transpose(2, 3, 1, 0).reshape(9 * C_in, C_out) * scale[None, :]
    if C_out_pad != C_out:
        w_flat = jnp.pad(w_flat, ((0, 0), (0, C_out_pad - C_out)))
        shift = jnp.pad(shift, (0, C_out_pad - C_out))

    # bf16 operands for the MXU / HBM traffic; epilogue + accumulation in f32.
    x_nhwc = x.transpose(0, 2, 3, 1).astype(compute_dtype)
    patches = _im2col_3x3_same_nhwc(x_nhwc)              # (N*H*W, 9*C_in)

    out_rows = _pallas_matmul_bias_relu(
        patches,
        w_flat.astype(compute_dtype),
        shift.astype(jnp.float32)[None, :],
    )                                                    # (N*H*W, C_out_pad) f32

    out = out_rows[:, :C_out].reshape(N, H, W, C_out)
    # PyTorch BasicConv returns NCHW; keep the transpose for API parity.
    # (If the consumer can take NHWC, return `out` directly and skip it.)
    return out.transpose(0, 3, 1, 2)


# ------------------------------ Parameters --------------------------------- #
def init_params(key, in_channels, out_channels):
    k_w, k_b, k_g, k_bt, k_rm, k_rv = jax.random.split(key, 6)
    fan_in = in_channels * 9
    bound = 1.0 / jnp.sqrt(fan_in)
    w = jax.random.uniform(k_w, (out_channels, in_channels, 3, 3),
                           minval=-bound, maxval=bound, dtype=jnp.float32)
    b = jax.random.uniform(k_b, (out_channels,),
                           minval=-bound, maxval=bound, dtype=jnp.float32)
    gamma = 1.0 + 0.1 * jax.random.normal(k_g, (out_channels,), jnp.float32)
    beta = 0.1 * jax.random.normal(k_bt, (out_channels,), jnp.float32)
    running_mean = 0.05 * jax.random.normal(k_rm, (out_channels,), jnp.float32)
    running_var = 1.0 + 0.1 * jax.random.uniform(k_rv, (out_channels,),
                                                 dtype=jnp.float32)
    return dict(w=w, b=b, gamma=gamma, beta=beta,
                running_mean=running_mean, running_var=running_var, eps=1e-5)


def reference_forward(x, params):
    """Pure-JAX reference (lax conv, f32) for a correctness check."""
    y = lax.conv_general_dilated(
        x, params["w"], window_strides=(1, 1), padding="SAME",
        dimension_numbers=("NCHW", "OIHW", "NCHW"))
    y = y + params["b"][None, :, None, None]
    scale = params["gamma"] / jnp.sqrt(params["running_var"] + params["eps"])
    y = (y - params["running_mean"][None, :, None, None]) * \
        scale[None, :, None, None] + params["beta"][None, :, None, None]
    return jnp.maximum(y, 0.0)


if __name__ == "__main__":
    key = jax.random.PRNGKey(0)
    k_x, k_p = jax.random.split(key)

    N, C_in, C_out, H, W = 2, 4, 8, 16, 16
    x = jax.random.normal(k_x, (N, C_in, H, W), dtype=jnp.float32)
    params = init_params(k_p, C_in, C_out)

    fwd = jax.jit(basic_conv_forward)
    out = jax.block_until_ready(fwd(x, params))
    ref = jax.block_until_ready(reference_forward(x, params))

    assert out.shape == (N, C_out, H, W)
    # bf16 operands -> loosened tolerance vs the f32 reference.
    assert jnp.allclose(out, ref, atol=5e-2, rtol=5e-2)
    print("KERNEL_OK")
</pallas_src>

<mosaic_0001>
module attributes {stable_mosaic.version = 11 : i64} {
  func.func @_matmul_bias_relu_kernel(%arg0: i32, %arg1: memref<256x36xbf16, #tpu.memory_space<vmem>>, %arg2: memref<36x128xbf16, #tpu.memory_space<vmem>>, %arg3: memref<1x128xf32, #tpu.memory_space<vmem>>, %arg4: memref<256x128xf32, #tpu.memory_space<vmem>>) attributes {dimension_semantics = [#tpu.dimension_semantics<parallel>], iteration_bounds = array<i64: 2>, scalar_prefetch = 0 : i64, scratch_operands = 0 : i64, tpu.core_type = #tpu.core_type<tc>, window_params = [{transform_indices = @transform_0, window_bounds = array<i64: 256, 36>}, {pipeline_mode = #tpu.pipeline_mode<synchronous>, transform_indices = @transform_1, window_bounds = array<i64: 36, 128>}, {pipeline_mode = #tpu.pipeline_mode<synchronous>, transform_indices = @transform_2, window_bounds = array<i64: 1, 128>}, {transform_indices = @transform_3, window_bounds = array<i64: 256, 128>}]} {
    %c0 = arith.constant 0 : index
    %c0_0 = arith.constant 0 : index
    %0 = vector.load %arg1[%c0, %c0_0] : memref<256x36xbf16, #tpu.memory_space<vmem>>, vector<256x36xbf16>
    %c0_1 = arith.constant 0 : index
    %c0_2 = arith.constant 0 : index
    %1 = vector.load %arg2[%c0_1, %c0_2] : memref<36x128xbf16, #tpu.memory_space<vmem>>, vector<36x128xbf16>
    %cst = arith.constant dense<0.000000e+00> : vector<256x128xf32>
    %2 = tpu.matmul %0, %1, %cst {dimension_numbers = #tpu.dot_dimension_numbers<[1], [0], [0], [1], [0, 0, 1, 1], [], []>} : vector<256x36xbf16>, vector<36x128xbf16>, vector<256x128xf32> -> vector<256x128xf32>
    %c0_3 = arith.constant 0 : index
    %c0_4 = arith.constant 0 : index
    %3 = vector.load %arg3[%c0_3, %c0_4] : memref<1x128xf32, #tpu.memory_space<vmem>>, vector<1x128xf32>
    %4 = vector.broadcast %3 : vector<1x128xf32> to vector<256x128xf32>
    %5 = arith.addf %2, %4 : vector<256x128xf32>
    %cst_5 = arith.constant 0.000000e+00 : f32
    %6 = vector.broadcast %cst_5 : f32 to vector<256x128xf32>
    %7 = arith.maximumf %5, %6 : vector<256x128xf32>
    %c0_6 = arith.constant 0 : index
    %c0_7 = arith.constant 0 : index
    %8 = vector.load %arg4[%c0_6, %c0_7] : memref<256x128xf32, #tpu.memory_space<vmem>>, vector<256x128xf32>
    tpu.vector_store %arg4[%c0_6, %c0_7], %7 {strides = array<i32>} : memref<256x128xf32, #tpu.memory_space<vmem>>, vector<256x128xf32>,
    return
  }
  func.func @transform_0(%arg0: i32) -> (i32, i32) {
    %c0_i32 = arith.constant 0 : i32
    %c0_i32_0 = arith.constant 0 : i32
    return %arg0, %c0_i32 : i32, i32
  }
  func.func @transform_1(%arg0: i32) -> (i32, i32) {
    %c0_i32 = arith.constant 0 : i32
    %c0_i32_0 = arith.constant 0 : i32
    %c0_i32_1 = arith.constant 0 : i32
    return %c0_i32, %c0_i32_0 : i32, i32
  }
  func.func @transform_2(%arg0: i32) -> (i32, i32) {
    %c0_i32 = arith.constant 0 : i32
    %c0_i32_0 = arith.constant 0 : i32
    %c0_i32_1 = arith.constant 0 : i32
    return %c0_i32, %c0_i32_0 : i32, i32
  }
  func.func @transform_3(%arg0: i32) -> (i32, i32) {
    %c0_i32 = arith.constant 0 : i32
    %c0_i32_0 = arith.constant 0 : i32
    return %arg0, %c0_i32 : i32, i32
  }
}

</mosaic_0001>

<bundles_post_ra>
// kernel: basic_conv_forward.1
= control target key start
LH: loop header
LB: loop body
LE: loop exit
PB: predicated region body
PF: predicated region fallthrough
CT: control target
= control target key end

     0   :  { %s815_s12 = smov 0   ;;  %s950_s0 = inlined_call_operand.vmem [shape: bf16[512,36], index: 0, kind: input, shape index: {}]   ;;  %s951_s1 = inlined_call_operand.vmem [shape: bf16[36,128], index: 1, kind: input, shape index: {}]   ;;  %s952_s2 = inlined_call_operand.vmem [shape: f32[1,128], index: 2, kind: input, shape index: {}]   ;;  %s953_s3 = inlined_call_operand.vmem [shape: f32[512,128], index: 3, kind: output, shape index: {}]  }
   0x1 LB: > { %s648_s13 = sadd.s32 4294967295, %s793_s12   ;;  %p652_p0 = scmp.ge.s32.totalorder %s793_s12, 1  ;;  %s793_s12 = sphi %s815_s12, %s13_s12  }
   0x2   : > { %p138_p1 = scmp.lt.s32.totalorder %s793_s12, 3 }
   0x4   : > { %p139_p2 = pnand %p652_p0, %p138_p1 }
   0x5   : > { %s653_s18 = sshll.u32 (!%p139_p2), %s648_s13, 5 }
   0x6   : > { %142 = sbr.rel (%p139_p2) target bundleno = 252 (0xfc), region = 32  ;;  %p163_p3 = scmp.lt.s32.totalorder (!%p139_p2), %s653_s18, 63 }
   0xb   : > { %v768_v0 = vld [vmem:[%s951_s1 + $0x10] ss:$0 sps:$4 sm:$0x33]   ;;  %vm363_vm0 = vcmask 1041408   ;;  %v769_v1 = vld [vmem:[%s951_s1 + $0x8] sm:$0xff]   ;;  %v770_v3 = vld [vmem:[%s951_s1] sm:$0xff]  }
   0xc   : > { %758 = vmatprep.subr.msk.bf16.mxu0 %vm363_vm0, %v768_v0  ;;  %759 = vmatprep.subr.msk.bf16.mxu1 %vm363_vm0, %v768_v0  ;;  %v365_v2 = vsel %vm363_vm0, %v768_v0, 0  ;;  %s955_s18 = smov (!%p163_p3, %s653_s18), 63  ;;  %vm314_vm1 = vcmask 293888   ;;  %v875_v20 = vld [vmem:[%s952_s2] ss:$0 sm:$0xff] }
   0xd   : > { %715 = vmatpush3.bf16.msra.mxu0 %v365_v2  ;;  %755 = vmatpush3.bf16.msra.mxu1 %v365_v2  ;;  %s654_s21 = sshll.u32 %s955_s18, 2  ;;  %s656_s27 = sshll.u32 %s955_s18, 3 }
   0xe   : > { %716 = vmatprep.subr.bf16.mxu0 %v769_v1  ;;  %753 = vmatprep.subr.bf16.mxu1 %v769_v1  ;;  %s838_s24 = scalar_lea.vmem %s950_s0, %s654_s21  ;;  %s883_s30 = scalar_lea.vmem %s953_s3, %s656_s27 }
   0xf   : > { %v771_v4 = vld [vmem:[%s838_s24] sm:$0xff]   ;;  %v773_v6 = vld [vmem:[%s838_s24 + $0x8] sm:$0xff]   ;;  %v775_v8 = vld [vmem:[%s838_s24 + $0x10] sm:$0xff]  }
  0x10   : > { %v772_v5 = vld [vmem:[%s838_s24 + $0x40] sm:$0xff]   ;;  %720 = vmatprep.mubr.msk.bf16.mxu0 %vm314_vm1, %v771_v4  ;;  %v774_v7 = vld [vmem:[%s838_s24 + $0x48] sm:$0xff]   ;;  %v776_v9 = vld [vmem:[%s838_s24 + $0x50] sm:$0xff]  }
  0x11   : > { %717 = vmatpush3.bf16.msra.mxu0 %v769_v1  ;;  %756 = vmatpush3.bf16.msra.mxu1 %v769_v1  ;;  %v777_v10 = vld [vmem:[%s838_s24 + $0x18] sm:$0xff]   ;;  %v779_v12 = vld [vmem:[%s838_s24 + $0x20] sm:$0xff]   ;;  %v781_v14 = vld [vmem:[%s838_s24 + $0x28] sm:$0xff]  }
  0x12   : > { %718 = vmatprep.subr.bf16.mxu0 %v770_v3  ;;  %754 = vmatprep.subr.bf16.mxu1 %v770_v3  ;;  %v778_v11 = vld [vmem:[%s838_s24 + $0x58] sm:$0xff]   ;;  %v780_v13 = vld [vmem:[%s838_s24 + $0x60] sm:$0xff]   ;;  %v782_v15 = vld [vmem:[%s838_s24 + $0x68] sm:$0xff]  }
  0x13   : > { %736 = vmatprep.mubr.msk.bf16.mxu1 %vm314_vm1, %v772_v5  ;;  %v783_v16 = vld [vmem:[%s838_s24 + $0x30] sm:$0xff]   ;;  %v785_v18 = vld [vmem:[%s838_s24 + $0x38] sm:$0xff]  }
  0x14   : > { %v784_v17 = vld [vmem:[%s838_s24 + $0x70] sm:$0xff]   ;;  %v786_v19 = vld [vmem:[%s838_s24 + $0x78] sm:$0xff]  }
  0x15   : > { %719 = vmatpush3.bf16.msra.mxu0 %v770_v3  ;;  %757 = vmatpush3.bf16.msra.mxu1 %v770_v3 }
  0x18   : > { %721 = vmatmul.mubr.msk.bf16.vlgmr.msra.gmra.mxu0 %vm314_vm1, %v773_v6  ;;  %737 = vmatmul.mubr.msk.bf16.vlgmr.msra.gmra.mxu1 %vm314_vm1, %v774_v7 }
  0x19   : > { %724 = vmatprep.mubr.msk.bf16.mxu0 %vm314_vm1, %v775_v8  ;;  %740 = vmatprep.mubr.msk.bf16.mxu1 %vm314_vm1, %v776_v9 }
  0x20   : > { %725 = vmatmul.mubr.msk.bf16.gmra.mxu0 %vm314_vm1, %v777_v10  ;;  %741 = vmatmul.mubr.msk.bf16.gmra.mxu1 %vm314_vm1, %v778_v11 }
  0x21   : > { %728 = vmatprep.mubr.msk.bf16.mxu0 %vm314_vm1, %v779_v12  ;;  %744 = vmatprep.mubr.msk.bf16.mxu1 %vm314_vm1, %v780_v13 }
  0x28   : > { %729 = vmatmul.mubr.msk.bf16.gmra.mxu0 %vm314_vm1, %v781_v14  ;;  %745 = vmatmul.mubr.msk.bf16.gmra.mxu1 %vm314_vm1, %v782_v15 }
  0x29   : > { %732 = vmatprep.mubr.msk.bf16.mxu0 %vm314_vm1, %v783_v16  ;;  %748 = vmatprep.mubr.msk.bf16.mxu1 %vm314_vm1, %v784_v17 }
  0x30   : > { %733 = vmatmul.mubr.msk.bf16.gmra.mxu0 %vm314_vm1, %v785_v18  ;;  %749 = vmatmul.mubr.msk.bf16.gmra.mxu1 %vm314_vm1, %v786_v19 }
  0xd8   : > { %v722_v21 = vpop.f32.mrf.mxu0  ;;  %v738_v22 = vpop.f32.mrf.mxu1 }
  0xd9   : > { %v410_v23 = vadd.f32 %v722_v21, %v875_v20  ;;  %v474_v24 = vadd.f32 %v738_v22, %v875_v20 }
  0xda   : > { %v401_v25 = vpop.f32.mrf.mxu0  ;;  %v465_v26 = vpop.f32.mrf.mxu1 }
  0xdb   : > { %v530_v27 = vmax.f32 %v410_v23, 0.0  ;;  %v546_v28 = vmax.f32 %v474_v24, 0.0  ;;  %v402_v29 = vadd.f32 %v875_v20, %v401_v25  ;;  %v466_v30 = vadd.f32 %v875_v20, %v465_v26 }
  0xdc   : > { %v723_v31 = vpop.f32.mrf.mxu0  ;;  %v739_v32 = vpop.f32.mrf.mxu1 }
  0xdd   : > { %562 = vst [vmem:[%s883_s30 + $0x10] sm:$0xff] %v530_v27  ;;  %578 = vst [vmem:[%s883_s30 + $0x90] sm:$0xff] %v546_v28  ;;  %v528_v33 = vmax.f32 %v402_v29, 0.0  ;;  %v544_v34 = vmax.f32 %v466_v30, 0.0  ;;  %v413_v35 = vadd.f32 %v723_v31, %v875_v20  ;;  %v477_v36 = vadd.f32 %v739_v32, %v875_v20 }
  0xde   : > { %v404_v37 = vpop.f32.mrf.mxu0  ;;  %v468_v38 = vpop.f32.mrf.mxu1 }
  0xdf   : > { %560 = vst [vmem:[%s883_s30] sm:$0xff] %v528_v33  ;;  %576 = vst [vmem:[%s883_s30 + $0x80] sm:$0xff] %v544_v34  ;;  %v531_v39 = vmax.f32 %v413_v35, 0.0  ;;  %v547_v40 = vmax.f32 %v477_v36, 0.0  ;;  %v405_v41 = vadd.f32 %v875_v20, %v404_v37  ;;  %v469_v42 = vadd.f32 %v875_v20, %v468_v38 }
  0xe0   : > { %v726_v43 = vpop.f32.mrf.mxu0  ;;  %v742_v44 = vpop.f32.mrf.mxu1 }
  0xe1   : > { %563 = vst [vmem:[%s883_s30 + $0x18] sm:$0xff] %v531_v39  ;;  %579 = vst [vmem:[%s883_s30 + $0x98] sm:$0xff] %v547_v40  ;;  %v529_v45 = vmax.f32 %v405_v41, 0.0  ;;  %v545_v46 = vmax.f32 %v469_v42, 0.0  ;;  %v426_v47 = vadd.f32 %v726_v43, %v875_v20  ;;  %v490_v48 = vadd.f32 %v742_v44, %v875_v20 }
  0xe2   : > { %v417_v49 = vpop.f32.mrf.mxu0  ;;  %v481_v50 = vpop.f32.mrf.mxu1 }
  0xe3   : > { %561 = vst [vmem:[%s883_s30 + $0x8] sm:$0xff] %v529_v45  ;;  %577 = vst [vmem:[%s883_s30 + $0x88] sm:$0xff] %v545_v46  ;;  %v534_v51 = vmax.f32 %v426_v47, 0.0  ;;  %v550_v52 = vmax.f32 %v490_v48, 0.0  ;;  %v418_v53 = vadd.f32 %v875_v20, %v417_v49  ;;  %v482_v54 = vadd.f32 %v875_v20, %v481_v50 }
  0xe4   : > { %v727_v55 = vpop.f32.mrf.mxu0  ;;  %v743_v56 = vpop.f32.mrf.mxu1 }
  0xe5   : > { %566 = vst [vmem:[%s883_s30 + $0x30] sm:$0xff] %v534_v51  ;;  %582 = vst [vmem:[%s883_s30 + $0xb0] sm:$0xff] %v550_v52  ;;  %v532_v57 = vmax.f32 %v418_v53, 0.0  ;;  %v548_v58 = vmax.f32 %v482_v54, 0.0  ;;  %v429_v59 = vadd.f32 %v727_v55, %v875_v20  ;;  %v493_v60 = vadd.f32 %v743_v56, %v875_v20 }
  0xe6   : > { %v420_v61 = vpop.f32.mrf.mxu0  ;;  %v484_v62 = vpop.f32.mrf.mxu1 }
  0xe7   : > { %564 = vst [vmem:[%s883_s30 + $0x20] sm:$0xff] %v532_v57  ;;  %580 = vst [vmem:[%s883_s30 + $0xa0] sm:$0xff] %v548_v58  ;;  %v535_v63 = vmax.f32 %v429_v59, 0.0  ;;  %v551_v0 = vmax.f32 %v493_v60, 0.0  ;;  %v421_v1 = vadd.f32 %v875_v20, %v420_v61  ;;  %v485_v2 = vadd.f32 %v875_v20, %v484_v62 }
  0xe8   : > { %v730_v3 = vpop.f32.mrf.mxu0  ;;  %v746_v4 = vpop.f32.mrf.mxu1 }
  0xe9   : > { %567 = vst [vmem:[%s883_s30 + $0x38] sm:$0xff] %v535_v63  ;;  %583 = vst [vmem:[%s883_s30 + $0xb8] sm:$0xff] %v551_v0  ;;  %v533_v5 = vmax.f32 %v421_v1, 0.0  ;;  %v549_v6 = vmax.f32 %v485_v2, 0.0  ;;  %v442_v7 = vadd.f32 %v730_v3, %v875_v20  ;;  %v506_v8 = vadd.f32 %v746_v4, %v875_v20 }
  0xea   : > { %v433_v9 = vpop.f32.mrf.mxu0  ;;  %v497_v10 = vpop.f32.mrf.mxu1 }
  0xeb   : > { %565 = vst [vmem:[%s883_s30 + $0x28] sm:$0xff] %v533_v5  ;;  %581 = vst [vmem:[%s883_s30 + $0xa8] sm:$0xff] %v549_v6  ;;  %v538_v11 = vmax.f32 %v442_v7, 0.0  ;;  %v554_v12 = vmax.f32 %v506_v8, 0.0  ;;  %v434_v13 = vadd.f32 %v875_v20, %v433_v9  ;;  %v498_v14 = vadd.f32 %v875_v20, %v497_v10 }
  0xec   : > { %v731_v15 = vpop.f32.mrf.mxu0  ;;  %v747_v16 = vpop.f32.mrf.mxu1 }
  0xed   : > { %570 = vst [vmem:[%s883_s30 + $0x50] sm:$0xff] %v538_v11  ;;  %586 = vst [vmem:[%s883_s30 + $0xd0] sm:$0xff] %v554_v12  ;;  %v536_v17 = vmax.f32 %v434_v13, 0.0  ;;  %v552_v18 = vmax.f32 %v498_v14, 0.0  ;;  %v445_v19 = vadd.f32 %v731_v15, %v875_v20  ;;  %v509_v21 = vadd.f32 %v747_v16, %v875_v20 }
  0xee   : > { %v436_v22 = vpop.f32.mrf.mxu0  ;;  %v500_v23 = vpop.f32.mrf.mxu1 }
  0xef   : > { %568 = vst [vmem:[%s883_s30 + $0x40] sm:$0xff] %v536_v17  ;;  %584 = vst [vmem:[%s883_s30 + $0xc0] sm:$0xff] %v552_v18  ;;  %v539_v24 = vmax.f32 %v445_v19, 0.0  ;;  %v555_v25 = vmax.f32 %v509_v21, 0.0  ;;  %v437_v26 = vadd.f32 %v875_v20, %v436_v22  ;;  %v501_v27 = vadd.f32 %v875_v20, %v500_v23 }
  0xf0   : > { %v734_v28 = vpop.f32.mrf.mxu0  ;;  %v750_v29 = vpop.f32.mrf.mxu1 }
  0xf1   : > { %571 = vst [vmem:[%s883_s30 + $0x58] sm:$0xff] %v539_v24  ;;  %587 = vst [vmem:[%s883_s30 + $0xd8] sm:$0xff] %v555_v25  ;;  %v537_v30 = vmax.f32 %v437_v26, 0.0  ;;  %v553_v31 = vmax.f32 %v501_v27, 0.0  ;;  %v458_v32 = vadd.f32 %v734_v28, %v875_v20  ;;  %v522_v33 = vadd.f32 %v750_v29, %v875_v20 }
  0xf2   : > { %v449_v34 = vpop.f32.mrf.mxu0  ;;  %v513_v35 = vpop.f32.mrf.mxu1 }
  0xf3   : > { %569 = vst [vmem:[%s883_s30 + $0x48] sm:$0xff] %v537_v30  ;;  %585 = vst [vmem:[%s883_s30 + $0xc8] sm:$0xff] %v553_v31  ;;  %v542_v36 = vmax.f32 %v458_v32, 0.0  ;;  %v558_v37 = vmax.f32 %v522_v33, 0.0  ;;  %v450_v38 = vadd.f32 %v875_v20, %v449_v34  ;;  %v514_v39 = vadd.f32 %v875_v20, %v513_v35 }
  0xf4   : > { %v735_v40 = vpop.f32.mrf.mxu0  ;;  %v751_v41 = vpop.f32.mrf.mxu1 }
  0xf5   : > { %574 = vst [vmem:[%s883_s30 + $0x70] sm:$0xff] %v542_v36  ;;  %590 = vst [vmem:[%s883_s30 + $0xf0] sm:$0xff] %v558_v37  ;;  %v540_v42 = vmax.f32 %v450_v38, 0.0  ;;  %v556_v43 = vmax.f32 %v514_v39, 0.0  ;;  %v461_v44 = vadd.f32 %v735_v40, %v875_v20  ;;  %v525_v45 = vadd.f32 %v751_v41, %v875_v20 }
  0xf6   : > { %v452_v46 = vpop.f32.mrf.mxu0  ;;  %v516_v47 = vpop.f32.mrf.mxu1 }
  0xf7   : > { %572 = vst [vmem:[%s883_s30 + $0x60] sm:$0xff] %v540_v42  ;;  %588 = vst [vmem:[%s883_s30 + $0xe0] sm:$0xff] %v556_v43  ;;  %v543_v48 = vmax.f32 %v461_v44, 0.0  ;;  %v559_v49 = vmax.f32 %v525_v45, 0.0  ;;  %v453_v50 = vadd.f32 %v875_v20, %v452_v46  ;;  %v517_v51 = vadd.f32 %v875_v20, %v516_v47 }
  0xf9   : > { %575 = vst [vmem:[%s883_s30 + $0x78] sm:$0xff] %v543_v48  ;;  %591 = vst [vmem:[%s883_s30 + $0xf8] sm:$0xff] %v559_v49  ;;  %v541_v52 = vmax.f32 %v453_v50, 0.0  ;;  %v557_v53 = vmax.f32 %v517_v51, 0.0 }
  0xfb   : > { %573 = vst [vmem:[%s883_s30 + $0x68] sm:$0xff] %v541_v52  ;;  %589 = vst [vmem:[%s883_s30 + $0xe8] sm:$0xff] %v557_v53 }
  0xfc PF: > { %s13_s12 = sadd.s32 1, %s793_s12  }
  0xfd   : > { %p10_p4 = scmp.ge.s32.totalorder %s13_s12, 4  }
  0xff   :  { %12 = sbr.rel (!%p10_p4) target bundleno = 1 (0x1), region = 62 }

</bundles_post_ra>
